<compile_context>
chip_gen: v7x
topology: tpu7x:2x2x1
jax: 0.10.0
libtpu: 0.0.40
codegen_flags: <defaults>
</compile_context>

<pallas_src>
import functools

import jax
import jax.numpy as jnp
from jax.experimental import pallas as pl
from jax.experimental.pallas import tpu as pltpu

MIN_NORM = 1e-15
EPS_F32 = 1e-7   # self.eps[torch.float32]


def decode_kernel(x_ref, w8_ref, b_ref, mass_ref, *, c):
    """logmap0 -> proj_tan0 (id) -> Linear(out=1) -> ReLU for one node tile.

    x_ref   : (tn, D)  natural-layout block of node embeddings (nodes on sublanes)
    w8_ref  : (8, D)   row 0 = linear weight, rows 1..7 = 0 (MXU-friendly lhs)
    b_ref   : (1, 1)   bias (SMEM scalar)
    mass_ref: (1, tn)  lane-dense output row (nodes on lanes)
    """
    x = x_ref[...]                                      # (tn, D) f32
    w8 = w8_ref[...]                                    # (8, D)
    sqrt_c = jnp.float32(c) ** 0.5

    # Two "transpose-reduce" matmuls on the otherwise idle MXU:
    #   out[r, n] = sum_d lhs[r, d] * x[n, d]   (contract the minor dim of both)
    # This avoids any host/XLU transpose while producing lane-dense (1, tn)
    # per-node scalars for the transcendental tail below.
    dn = (((1,), (1,)), ((), ()))                       # A @ x^T
    xw = jax.lax.dot_general(w8, x, dn,
                             preferred_element_type=jnp.float32)[0:1, :]   # (1, tn) = x.w
    sq = jax.lax.dot_general(jnp.ones_like(w8), x * x, dn,
                             preferred_element_type=jnp.float32)[0:1, :]   # (1, tn) = ||x||^2

    norm = jnp.maximum(jnp.sqrt(sq), MIN_NORM)
    z = jnp.clip(sqrt_c * norm, -1.0 + 1e-7, 1.0 - 1e-7)
    # artanh(z) = 0.5 * log((1+z)/(1-z)) -- exact divides (kernel is HBM-bound,
    # EUP cost is hidden; approx reciprocals only cost accuracy near the boundary).
    artanh = 0.5 * jnp.log((1.0 + z) / (1.0 - z))
    scale = artanh / (sqrt_c * norm)

    # logmap0 followed by the 1-wide Linear collapses to scale * (x.w) + b.
    h = scale * xw + b_ref[0, 0]
    mass_ref[...] = jnp.maximum(h, 0.0)                 # act = ReLU


def gravity_decoder(x, idx, dist, w, b, *, c=1.0, beta=1.0, lamb=1.0, tn=4096):
    """x: (N, D) Poincare-ball embeddings, w: (D, 1), b: (1, 1), idx: (E, 2),
    dist: (E,).  Returns (probs (E,), mass (N, 1))."""
    N, D = x.shape
    assert w.shape == (D, 1), "GravityDecoder uses a scalar mass head (out_features == 1)"

    # Tile selection: as large as possible (amortize ~0.35 us/step pipeline
    # overhead) but keep >= 2 grid steps so ("parallel",) can use both
    # TensorCores on v7x.  Always a multiple of 128 lanes.
    tn_eff = max(128, min(int(tn), ((pl.cdiv(N, 2) + 127) // 128) * 128))
    n_tiles = pl.cdiv(N, tn_eff)

    # MXU-friendly (8, D) lhs: row 0 is the linear weight column, rest zero.
    w8 = jnp.zeros((8, D), jnp.float32).at[0, :].set(w[:, 0].astype(jnp.float32))
    b_smem = jnp.asarray(b, jnp.float32).reshape(1, 1)

    compiler_params = pltpu.CompilerParams(
        dimension_semantics=("parallel",),        # v7x: shard node tiles across 2 TCs
        vmem_limit_bytes=32 * 1024 * 1024,        # tiles are small; safe on v5e/v6e/v7x
    )

    # ---- pass 1 (Pallas): mass = ReLU(Linear(proj_tan0(logmap0(x)))) ------------
    # Natural (tn, D) input blocks (no host transpose / pad); Pallas handles the
    # ragged final block -- its pad lanes compute on unspecified data but every
    # node's output depends only on its own row, and out-of-bounds stores are
    # dropped, so nothing valid is contaminated.
    mass_row = pl.pallas_call(
        functools.partial(decode_kernel, c=c),
        out_shape=jax.ShapeDtypeStruct((1, N), jnp.float32),
        grid=(n_tiles,),
        in_specs=[
            pl.BlockSpec((tn_eff, D), lambda i: (i, 0)),
            pl.BlockSpec((8, D), lambda i: (0, 0)),
            pl.BlockSpec(memory_space=pltpu.MemorySpace.SMEM),   # scalar bias
        ],
        out_specs=pl.BlockSpec((1, tn_eff), lambda i: (0, i)),
        compiler_params=compiler_params,
    )(x.astype(jnp.float32), w8, b_smem)

    mass_flat = mass_row[0]                              # (N,)
    mass = mass_flat[:, None]                            # (N, 1): module output layout

    # ---- pass 2 (fused XLA): probs = sigmoid(beta*mass[dst] - lamb*log(dist+eps))
    # Trivially fusable elementwise epilogue; a Pallas call here would force
    # padded HBM copies of both E-length operands that cost more than the op.
    # TODO(synk): for very large E, fold the gather into the decode output via an
    # in-kernel VMEM gather (full-VMEM mass operand + idx tiles) once a general
    # dynamic lane-gather is available in the kernel.
    mass_dst = jnp.take(mass_flat, idx[:, 1].astype(jnp.int32), axis=0)    # (E,)
    probs = jax.nn.sigmoid(beta * mass_dst
                           - lamb * jnp.log(dist.astype(jnp.float32) + EPS_F32))
    return probs, mass


if __name__ == "__main__":
    key = jax.random.PRNGKey(0)
    N, D, OUT, E = 1000, 32, 1, 1500          # exercises the ragged-last-block path
    c, beta, lamb = 1.0, 1.0, 1.0

    k_x, k_w, k_b, k_i, k_d = jax.random.split(key, 5)
    # points inside the Poincare ball (small norms)
    x = 0.1 * jax.random.normal(k_x, (N, D), dtype=jnp.float32)
    # synthetic Linear parameters (weight stored as (in, out))
    w = jax.random.normal(k_w, (D, OUT), dtype=jnp.float32) / jnp.sqrt(D)
    b = jax.random.normal(k_b, (1, OUT), dtype=jnp.float32) * 0.01
    idx = jax.random.randint(k_i, (E, 2), 0, N, dtype=jnp.int32)
    dist = jax.random.uniform(k_d, (E,), dtype=jnp.float32, minval=0.1, maxval=3.0)

    probs, mass = gravity_decoder(x, idx, dist, w, b, c=c, beta=beta, lamb=lamb)
    jax.block_until_ready((probs, mass))

    # reference check in plain JAX
    sqrt_c = jnp.sqrt(c)
    norm = jnp.maximum(jnp.linalg.norm(x, axis=-1, keepdims=True), MIN_NORM)
    z = jnp.clip(sqrt_c * norm, -1 + 1e-7, 1 - 1e-7)
    x_tan = (0.5 * jnp.log((1 + z) / (1 - z))) / (sqrt_c * norm) * x
    mass_ref = jnp.maximum(x_tan @ w + b, 0.0)
    probs_ref = jax.nn.sigmoid(
        beta * mass_ref[idx[:, 1], 0] - lamb * jnp.log(dist + EPS_F32))

    # exact divides in-kernel; remaining delta is only MXU rounding on the f32 dots
    assert jnp.allclose(mass, mass_ref, atol=2e-3), "mass mismatch"
    assert jnp.allclose(probs, probs_ref, atol=2e-3), "probs mismatch"

    print("KERNEL_OK")
</pallas_src>

<mosaic_0001>
module attributes {stable_mosaic.version = 11 : i64} {
  func.func @decode_kernel(%arg0: i32, %arg1: memref<512x32xf32, #tpu.memory_space<vmem>>, %arg2: memref<8x32xf32, #tpu.memory_space<vmem>>, %arg3: memref<1x1xf32, #tpu.memory_space<smem>>, %arg4: memref<1x512xf32, #tpu.memory_space<vmem>>) attributes {dimension_semantics = [#tpu.dimension_semantics<parallel>], iteration_bounds = array<i64: 2>, scalar_prefetch = 0 : i64, scratch_operands = 0 : i64, tpu.core_type = #tpu.core_type<tc>, window_params = [{transform_indices = @transform_0, window_bounds = array<i64: 512, 32>}, {pipeline_mode = #tpu.pipeline_mode<synchronous>, transform_indices = @transform_1, window_bounds = array<i64: 8, 32>}, {transform_indices = @transform_2, window_bounds = array<i64: 1, 1>}, {transform_indices = @transform_3, window_bounds = array<i64: 1, 512>}]} {
    %c0 = arith.constant 0 : index
    %c0_0 = arith.constant 0 : index
    %0 = vector.load %arg1[%c0, %c0_0] : memref<512x32xf32, #tpu.memory_space<vmem>>, vector<512x32xf32>
    %c0_1 = arith.constant 0 : index
    %c0_2 = arith.constant 0 : index
    %1 = vector.load %arg2[%c0_1, %c0_2] : memref<8x32xf32, #tpu.memory_space<vmem>>, vector<8x32xf32>
    %cst = arith.constant 1.000000e+00 : f32
    %cst_3 = arith.constant 5.000000e-01 : f32
    %2 = math.powf %cst, %cst_3 : f32
    %cst_4 = arith.constant dense<0.000000e+00> : vector<8x512xf32>
    %3 = tpu.matmul %1, %0, %cst_4 {dimension_numbers = #tpu.dot_dimension_numbers<[1], [1], [0], [0], [0, 0, 1, 0], [], []>} : vector<8x32xf32>, vector<512x32xf32>, vector<8x512xf32> -> vector<8x512xf32>
    %4 = vector.extract_strided_slice %3 {offsets = [0, 0], sizes = [1, 512], strides = [1, 1]} : vector<8x512xf32> to vector<1x512xf32>
    %cst_5 = arith.constant 1.000000e+00 : f32
    %5 = vector.broadcast %cst_5 : f32 to vector<8x32xf32>
    %6 = arith.mulf %0, %0 : vector<512x32xf32>
    %cst_6 = arith.constant dense<0.000000e+00> : vector<8x512xf32>
    %7 = tpu.matmul %5, %6, %cst_6 {dimension_numbers = #tpu.dot_dimension_numbers<[1], [1], [0], [0], [0, 0, 1, 0], [], []>} : vector<8x32xf32>, vector<512x32xf32>, vector<8x512xf32> -> vector<8x512xf32>
    %8 = vector.extract_strided_slice %7 {offsets = [0, 0], sizes = [1, 512], strides = [1, 1]} : vector<8x512xf32> to vector<1x512xf32>
    %9 = math.sqrt %8 : vector<1x512xf32>
    %cst_7 = arith.constant 1.000000e-15 : f32
    %10 = vector.broadcast %cst_7 : f32 to vector<1x512xf32>
    %11 = arith.maximumf %9, %10 : vector<1x512xf32>
    %12 = vector.broadcast %2 : f32 to vector<1x512xf32>
    %13 = arith.mulf %12, %11 : vector<1x512xf32>
    %cst_8 = arith.constant -0.99999988 : f32
    %cst_9 = arith.constant 0.99999988 : f32
    %14 = vector.broadcast %cst_8 : f32 to vector<1x512xf32>
    %15 = arith.maximumf %14, %13 : vector<1x512xf32>
    %16 = vector.broadcast %cst_9 : f32 to vector<1x512xf32>
    %17 = arith.minimumf %16, %15 : vector<1x512xf32>
    %cst_10 = arith.constant 1.000000e+00 : f32
    %18 = vector.broadcast %cst_10 : f32 to vector<1x512xf32>
    %19 = arith.addf %18, %17 : vector<1x512xf32>
    %cst_11 = arith.constant 1.000000e+00 : f32
    %20 = vector.broadcast %cst_11 : f32 to vector<1x512xf32>
    %21 = arith.subf %20, %17 : vector<1x512xf32>
    %22 = arith.divf %19, %21 : vector<1x512xf32>
    %23 = math.log %22 : vector<1x512xf32>
    %cst_12 = arith.constant 5.000000e-01 : f32
    %24 = vector.broadcast %cst_12 : f32 to vector<1x512xf32>
    %25 = arith.mulf %24, %23 : vector<1x512xf32>
    %26 = vector.broadcast %2 : f32 to vector<1x512xf32>
    %27 = arith.mulf %26, %11 : vector<1x512xf32>
    %28 = arith.divf %25, %27 : vector<1x512xf32>
    %29 = arith.mulf %28, %4 : vector<1x512xf32>
    %c0_13 = arith.constant 0 : index
    %c0_14 = arith.constant 0 : index
    %30 = memref.load %arg3[%c0_13, %c0_14] : memref<1x1xf32, #tpu.memory_space<smem>>
    %31 = vector.broadcast %30 : f32 to vector<1x512xf32>
    %32 = arith.addf %29, %31 : vector<1x512xf32>
    %cst_15 = arith.constant 0.000000e+00 : f32
    %33 = vector.broadcast %cst_15 : f32 to vector<1x512xf32>
    %34 = arith.maximumf %32, %33 : vector<1x512xf32>
    %c0_16 = arith.constant 0 : index
    %c0_17 = arith.constant 0 : index
    %35 = vector.load %arg4[%c0_16, %c0_17] : memref<1x512xf32, #tpu.memory_space<vmem>>, vector<1x512xf32>
    tpu.vector_store %arg4[%c0_16, %c0_17], %34 {strides = array<i32>} : memref<1x512xf32, #tpu.memory_space<vmem>>, vector<1x512xf32>,
    return
  }
  func.func @transform_0(%arg0: i32) -> (i32, i32) {
    %c0_i32 = arith.constant 0 : i32
    %c0_i32_0 = arith.constant 0 : i32
    return %arg0, %c0_i32 : i32, i32
  }
  func.func @transform_1(%arg0: i32) -> (i32, i32) {
    %c0_i32 = arith.constant 0 : i32
    %c0_i32_0 = arith.constant 0 : i32
    %c0_i32_1 = arith.constant 0 : i32
    return %c0_i32, %c0_i32_0 : i32, i32
  }
  func.func @transform_2(%arg0: i32) -> (i32, i32) {
    %c0_i32 = arith.constant 0 : i32
    %c0_i32_0 = arith.constant 0 : i32
    %c0_i32_1 = arith.constant 0 : i32
    return %c0_i32, %c0_i32_0 : i32, i32
  }
  func.func @transform_3(%arg0: i32) -> (i32, i32) {
    %c0_i32 = arith.constant 0 : i32
    %c0_i32_0 = arith.constant 0 : i32
    return %c0_i32, %arg0 : i32, i32
  }
}

</mosaic_0001>

<bundles_post_ra>
// kernel: tpu_custom_call.1
= control target key start
LH: loop header
LB: loop body
LE: loop exit
PB: predicated region body
PF: predicated region fallthrough
CT: control target
= control target key end

     0   :  { %s2487_s0 = inlined_call_operand.vmem [shape: f32[1000,32], index: 0, kind: input, shape index: {}]   ;;  %s2488_s1 = inlined_call_operand.vmem [shape: f32[8,32], index: 1, kind: input, shape index: {}]   ;;  %s2489_s2 = inlined_call_operand.<no memory space> [shape: f32[1,1], index: 2, kind: input, shape index: {}]   ;;  %s2490_s3 = inlined_call_operand.hbm [shape: f32[1,1000], index: 3, kind: output, shape index: {}]  }
   0x1   :  { %8 = sst [smem:[#allocation2]] %s2489_s2 }
   0x2   :  { %9 = vsyncpa [#allocation4], 0 }
   0x3   :  { %11 = vsyncpa [#allocation4 + $0x1], 0  ;;  %s1835_s14 = smov 0   ;;  %s1837_s15 = smov 0  }
   0x4   :  { %s1839_s16 = smov 0   ;;  %s1841_s17 = smov 0  }
   0x5 LB: > { %s1194_s2 = sadd.s32 4294967295, %s1807_s17   ;;  %s1195_s18 = sadd.s32 4294967294, %s1807_s17   ;;  %s1807_s17 = sphi %s1841_s17, %s2528_s17   ;;  %s1803_s16 = sphi %s1839_s16, %s2527_s16   ;;  %s1799_s15 = sphi %s1837_s15, %s2526_s15   ;;  %s1795_s14 = sphi %s1835_s14, %s2525_s14  }
   0x6   : > { %s1858_s19 = sadd.s32 1, %s1807_s17   ;;  %s92_s20 = sadd.s32 1, %s1803_s16 }
   0x7   : > { %s89_s21 = ssub.s32 %s1807_s17, %s1858_s19  ;;  %p102_p0 = scmp.ne.s32.totalorder %s1803_s16, %s1799_s15 }
   0x8   : > { %p90_p1 = scmp.eq.s32.totalorder %s89_s21, 0  ;;  %p103_p2 = scmp.eq.s32.totalorder %s1194_s2, 1 }
   0x9   : > { %p108_p3 = scmp.ne.s32.totalorder %s1799_s15, %s1795_s14  ;;  %p109_p4 = scmp.eq.s32.totalorder %s1195_s18, 1 }
   0xa   : > { %s1868_s22 = scalar_select %p90_p1, %s1803_s16, %s92_s20  }
   0xb   : > { %p1870_p5 = por %p103_p2, %p102_p0  ;;  %p1874_p6 = por %p109_p4, %p108_p3 }
   0xc   : > { %p1198_p7 = scmp.ge.s32.totalorder %s1807_s17, 1  ;;  %p150_p8 = scmp.lt.s32.totalorder %s1807_s17, 3 }
   0xe   : > { %p151_p9 = pnand %p1198_p7, %p150_p8 }
  0x10   : > { %154 = sbr.rel (%p151_p9) target bundleno = 456 (0x1c8), region = 32 }
  0x17   : > { %s1880_s25 = sshll.u32 %s1194_s2, 6  ;;  %vm258_vm0 = vcmask 261120   ;;  %v1885_v0 = vld [vmem:[%s2488_s1] sm:$0xff]  ;;  %s1077_s6 = sld [smem:[#allocation2]] }
  0x18   : > { %p183_p10 = scmp.lt.s32.totalorder %s1880_s25, 124  ;;  %1376 = vmatprep.mubr.msk.f32.mxu0 %vm258_vm0, %v1885_v0  ;;  %1410 = vmatprep.mubr.msk.f32.mxu1 %vm258_vm0, %v1885_v0  ;;  %vm1900_vm1 = vmpackc.low %vm258_vm0, %vm258_vm0  ;;  %s175_s7 = sand.u32 1, %s1799_s15  }
  0x19   : > { %s1199_s8 = sshll.u32 %s175_s7, 2  ;;  %s2445_s13 = scalar_lea.hbm %s2490_s3, %s1880_s25 }
  0x1a   : > { %s184_s28 = scalar_select %p183_p10, %s1880_s25, 124 }
  0x1b   : > { %s177_s9 = scalar_lea.vmem [#allocation3], %s1199_s8  ;;  %s1122_s2 = scalar_lea.sflag [#allocation4], %s175_s7 }
  0x1c   : > { %s1201_s29 = sshll.u32 %s184_s28, 3  ;;  %s1136_s10 = sshll.u32 %s177_s9, 4  ;;  %s2447_s10 = int_to_ptr.vmem [resolvable:$true] %s1136_s10 }
  0x1d   : > { %s1896_s5 = scalar_lea.vmem %s2487_s0, %s1201_s29  ;;  %s1745_s18 = scalar_lea.vmem %s2447_s10, 64 }
  0x1e   : > { %v1905_v2 = vld [vmem:[%s1896_s5 + $0x80] sm:$0xff]  ;;  %v1908_v3 = vld [vmem:[%s1896_s5 + $0x88] sm:$0xff]  ;;  %v1935_v13 = vld [vmem:[%s1896_s5 + $0x90] sm:$0xff]  ;;  %p1746_p11 = scmp.ne.s32.totalorder %s2447_s10, %s1745_s18  ;;  %s1811_s20 = smov [#allocation3]  }
  0x1f   : > { %v1911_v4 = vld [vmem:[%s1896_s5 + $0x180] sm:$0xff]  ;;  %v1480_v5 = vpack.c.bf16 %v1908_v3, %v1905_v2  ;;  %v1916_v6 = vld [vmem:[%s1896_s5 + $0x188] sm:$0xff]  ;;  %v1942_v15 = vld [vmem:[%s1896_s5 + $0x98] sm:$0xff]  ;;  %s1749_s21 = sshll.u32 %s1811_s20, 4  ;;  %s1750_s21 = int_to_ptr.vmem [resolvable:$false] %s1749_s21 }
  0x20   : > { %v1919_v7 = vld [vmem:[%s1896_s5] sm:$0xff]  ;;  %v1922_v8 = vld [vmem:[%s1896_s5 + $0x8] sm:$0xff]  ;;  %v1528_v9 = vpack.c.bf16 %v1916_v6, %v1911_v4  ;;  %v1945_v16 = vld [vmem:[%s1896_s5 + $0x190] sm:$0xff]  ;;  %v1486_v18 = vpack.c.bf16 %v1942_v15, %v1935_v13  ;;  %p1747_p12 = pnand %p1746_p11, %p1870_p5  ;;  %s1751_s26 = scalar_lea.vmem %s1750_s21, 128 }
  0x21   : > { %v1483_v10 = vpack.c.bf16 %v1922_v8, %v1919_v7  ;;  %v1929_v11 = vld [vmem:[%s1896_s5 + $0x100] sm:$0xff]  ;;  %v1932_v12 = vld [vmem:[%s1896_s5 + $0x108] sm:$0xff]  ;;  %1482 = vmatprep.subr.msk.bf16.mxu0 %vm1900_vm1, %v1480_v5  ;;  %v1948_v17 = vld [vmem:[%s1896_s5 + $0x198] sm:$0xff]  ;;  %p1752_p0 = scmp.lt.s32.totalorder %s2447_s10, %s1750_s21  ;;  %p1753_p1 = scmp.lt.s32.totalorder %s1751_s26, %s1745_s18 }
  0x22   : > { %v1531_v14 = vpack.c.bf16 %v1932_v12, %v1929_v11  ;;  %1530 = vmatprep.subr.msk.bf16.mxu1 %vm1900_vm1, %v1528_v9  ;;  %v1534_v19 = vpack.c.bf16 %v1948_v17, %v1945_v16  ;;  %v1961_v20 = vld [vmem:[%s1896_s5 + $0x10] sm:$0xff]  ;;  %v1964_v21 = vld [vmem:[%s1896_s5 + $0x18] sm:$0xff]  ;;  %v1975_v24 = vld [vmem:[%s1896_s5 + $0xa0] sm:$0xff]  ;;  %p1748_p13 = pneg %p1747_p12 }
  0x23   : > { %1485 = vmatpush3.bf16.xpose.msk.msra.mxu0 %vm1900_vm1, %v1483_v10  ;;  %v1967_v22 = vld [vmem:[%s1896_s5 + $0x110] sm:$0xff]  ;;  %v1972_v23 = vld [vmem:[%s1896_s5 + $0x118] sm:$0xff]  ;;  %v1978_v25 = vld [vmem:[%s1896_s5 + $0xa8] sm:$0xff]  ;;  %v1489_v28 = vpack.c.bf16 %v1964_v21, %v1961_v20  ;;  %p1754_p2 = por %p1753_p1, %p1752_p0 }
  0x24   : > { %1533 = vmatpush3.bf16.xpose.msk.msra.mxu1 %vm1900_vm1, %v1531_v14  ;;  %1488 = vmatprep.subr.msk.bf16.mxu0 %vm1900_vm1, %v1486_v18  ;;  %v1983_v26 = vld [vmem:[%s1896_s5 + $0x1a0] sm:$0xff]  ;;  %v1986_v27 = vld [vmem:[%s1896_s5 + $0x1a8] sm:$0xff]  ;;  %v1537_v29 = vpack.c.bf16 %v1972_v23, %v1967_v22  ;;  %v1492_v30 = vpack.c.bf16 %v1978_v25, %v1975_v24  ;;  %v2017_v36 = vld [vmem:[%s1896_s5 + $0xb0] sm:$0xff] }
  0x25   : > { %1536 = vmatprep.subr.msk.bf16.mxu1 %vm1900_vm1, %v1534_v19  ;;  %v1540_v31 = vpack.c.bf16 %v1986_v27, %v1983_v26  ;;  %v2003_v32 = vld [vmem:[%s1896_s5 + $0x20] sm:$0xff]  ;;  %v2006_v33 = vld [vmem:[%s1896_s5 + $0x28] sm:$0xff]  ;;  %v2020_v37 = vld [vmem:[%s1896_s5 + $0xb8] sm:$0xff]  ;;  %p1755_p3 = pnand %p1754_p2, %p1748_p13 }
  0x26   : > { %v2009_v34 = vld [vmem:[%s1896_s5 + $0x120] sm:$0xff]  ;;  %v2014_v35 = vld [vmem:[%s1896_s5 + $0x128] sm:$0xff]  ;;  %v2023_v38 = vld [vmem:[%s1896_s5 + $0x1b0] sm:$0xff]  ;;  %v1495_v40 = vpack.c.bf16 %v2006_v33, %v2003_v32  ;;  %v1498_v42 = vpack.c.bf16 %v2020_v37, %v2017_v36 }
  0x27   : > { %v2026_v39 = vld [vmem:[%s1896_s5 + $0x1b8] sm:$0xff]  ;;  %v1543_v41 = vpack.c.bf16 %v2014_v35, %v2009_v34  ;;  %v2043_v44 = vld [vmem:[%s1896_s5 + $0x30] sm:$0xff]  ;;  %v2057_v48 = vld [vmem:[%s1896_s5 + $0xc0] sm:$0xff] }
  0x28   : > { %v1546_v43 = vpack.c.bf16 %v2026_v39, %v2023_v38  ;;  %v2046_v45 = vld [vmem:[%s1896_s5 + $0x38] sm:$0xff]  ;;  %v2049_v46 = vld [vmem:[%s1896_s5 + $0x130] sm:$0xff]  ;;  %v2060_v49 = vld [vmem:[%s1896_s5 + $0xc8] sm:$0xff] }
  0x29   : > { %v2054_v47 = vld [vmem:[%s1896_s5 + $0x138] sm:$0xff]  ;;  %v2063_v50 = vld [vmem:[%s1896_s5 + $0x1c0] sm:$0xff]  ;;  %v2066_v51 = vld [vmem:[%s1896_s5 + $0x1c8] sm:$0xff]  ;;  %v1501_v52 = vpack.c.bf16 %v2046_v45, %v2043_v44  ;;  %v1504_v54 = vpack.c.bf16 %v2060_v49, %v2057_v48 }
  0x2a   : > { %v1549_v53 = vpack.c.bf16 %v2054_v47, %v2049_v46  ;;  %v1552_v55 = vpack.c.bf16 %v2066_v51, %v2063_v50  ;;  %v2083_v56 = vld [vmem:[%s1896_s5 + $0x40] sm:$0xff]  ;;  %v2086_v57 = vld [vmem:[%s1896_s5 + $0x48] sm:$0xff]  ;;  %v2097_v60 = vld [vmem:[%s1896_s5 + $0xd0] sm:$0xff] }
  0x2b   : > { %1491 = vmatpush3.bf16.xpose.msk.msra.mxu0 %vm1900_vm1, %v1489_v28  ;;  %v2089_v58 = vld [vmem:[%s1896_s5 + $0x140] sm:$0xff]  ;;  %v2094_v59 = vld [vmem:[%s1896_s5 + $0x148] sm:$0xff]  ;;  %v2100_v61 = vld [vmem:[%s1896_s5 + $0xd8] sm:$0xff]  ;;  %v1507_v5 = vpack.c.bf16 %v2086_v57, %v2083_v56 }
  0x2c   : > { %1539 = vmatpush3.bf16.xpose.msk.msra.mxu1 %vm1900_vm1, %v1537_v29  ;;  %1494 = vmatprep.subr.msk.bf16.mxu0 %vm1900_vm1, %v1492_v30  ;;  %v2103_v62 = vld [vmem:[%s1896_s5 + $0x1d0] sm:$0xff]  ;;  %v2106_v63 = vld [vmem:[%s1896_s5 + $0x1d8] sm:$0xff]  ;;  %v1555_v9 = vpack.c.bf16 %v2094_v59, %v2089_v58  ;;  %v1510_v10 = vpack.c.bf16 %v2100_v61, %v2097_v60  ;;  %v2137_v30 = vld [vmem:[%s1896_s5 + $0xe0] sm:$0xff] }
  0x2d   : > { %1542 = vmatprep.subr.msk.bf16.mxu1 %vm1900_vm1, %v1540_v31  ;;  %v1558_v14 = vpack.c.bf16 %v2106_v63, %v2103_v62  ;;  %v2123_v18 = vld [vmem:[%s1896_s5 + $0x50] sm:$0xff]  ;;  %v2126_v19 = vld [vmem:[%s1896_s5 + $0x58] sm:$0xff]  ;;  %2505 = vst [vmem:[#allocation6_spill] sm:$0xff] %v2137_v30  ;;  %v2140_v31 = vld [vmem:[%s1896_s5 + $0xe8] sm:$0xff] }
  0x2e   : > { %v2129_v28 = vld [vmem:[%s1896_s5 + $0x150] sm:$0xff]  ;;  %v2134_v29 = vld [vmem:[%s1896_s5 + $0x158] sm:$0xff]  ;;  %2506 = vst [vmem:[#allocation7_spill] sm:$0xff] %v2140_v31 }
  0x33   : > { %1497 = vmatpush3.bf16.xpose.msk.msra.mxu0 %vm1900_vm1, %v1495_v40  ;;  %v2143_v40 = vld [vmem:[%s1896_s5 + $0x1e0] sm:$0xff] }
  0x34   : > { %1545 = vmatpush3.bf16.xpose.msk.msra.mxu1 %vm1900_vm1, %v1543_v41  ;;  %1500 = vmatprep.subr.msk.bf16.mxu0 %vm1900_vm1, %v1498_v42  ;;  %2507 = vst [vmem:[#allocation8_spill] sm:$0xff] %v2143_v40  ;;  %v2146_v41 = vld [vmem:[%s1896_s5 + $0x1e8] sm:$0xff]  ;;  %v1513_v42 = vpack.c.bf16 %v2126_v19, %v2123_v18 }
  0x35   : > { %1548 = vmatprep.subr.msk.bf16.mxu1 %vm1900_vm1, %v1546_v43  ;;  %2508 = vst [vmem:[#allocation9_spill] sm:$0xff] %v2146_v41  ;;  %v1561_v43 = vpack.c.bf16 %v2134_v29, %v2129_v28 }
  0x3b   : > { %1503 = vmatpush3.bf16.xpose.msk.msra.mxu0 %vm1900_vm1, %v1501_v52  ;;  %v1516_v52 = vpack.c.bf16 %v2140_v31, %v2137_v30  ;;  %v612_v31 = vmul.f32 %v1905_v2, %v1905_v2  ;;  %v613_v30 = vmul.f32 %v1908_v3, %v1908_v3  ;;  %v2219_v2 = vld [vmem:[%s1896_s5 + $0x170] sm:$0xff]  ;;  %v2222_v3 = vld [vmem:[%s1896_s5 + $0x178] sm:$0xff] }
  0x3c   : > { %1551 = vmatpush3.bf16.xpose.msk.msra.mxu1 %vm1900_vm1, %v1549_v53  ;;  %1506 = vmatprep.subr.msk.bf16.mxu0 %vm1900_vm1, %v1504_v54  ;;  %v1564_v53 = vpack.c.bf16 %v2146_v41, %v2143_v40  ;;  %v2163_v54 = vld [vmem:[%s1896_s5 + $0x60] sm:$0xff] }
  0x3d   : > { %1554 = vmatprep.subr.msk.bf16.mxu1 %vm1900_vm1, %v1552_v55  ;;  %v2166_v55 = vld [vmem:[%s1896_s5 + $0x68] sm:$0xff] }
  0x43   : > { %1509 = vmatpush3.bf16.xpose.msk.msra.mxu0 %vm1900_vm1, %v1507_v5  ;;  %v2169_v5 = vld [vmem:[%s1896_s5 + $0x160] sm:$0xff] }
  0x44   : > { %1557 = vmatpush3.bf16.xpose.msk.msra.mxu1 %vm1900_vm1, %v1555_v9  ;;  %1512 = vmatprep.subr.msk.bf16.mxu0 %vm1900_vm1, %v1510_v10  ;;  %v2174_v9 = vld [vmem:[%s1896_s5 + $0x168] sm:$0xff]  ;;  %v2177_v10 = vld [vmem:[%s1896_s5 + $0xf0] sm:$0xff] }
  0x45   : > { %1560 = vmatprep.subr.msk.bf16.mxu1 %vm1900_vm1, %v1558_v14  ;;  %2509 = vst [vmem:[#allocation10_spill] sm:$0xff] %v2174_v9  ;;  %2510 = vst [vmem:[#allocation11_spill] sm:$0xff] %v2177_v10  ;;  %v2180_v14 = vld [vmem:[%s1896_s5 + $0xf8] sm:$0xff]  ;;  %v1567_v41 = vpack.c.bf16 %v2174_v9, %v2169_v5  ;;  %v2207_v9 = vld [vmem:[%s1896_s5 + $0x70] sm:$0xff] }
  0x46   : > { %2511 = vst [vmem:[#allocation12_spill] sm:$0xff] %v2180_v14 }
  0x4b   : > { %1515 = vmatpush3.bf16.xpose.msk.msra.mxu0 %vm1900_vm1, %v1513_v42  ;;  %v2183_v42 = vld [vmem:[%s1896_s5 + $0x1f0] sm:$0xff] }
  0x4c   : > { %1563 = vmatpush3.bf16.xpose.msk.msra.mxu1 %vm1900_vm1, %v1561_v43  ;;  %1518 = vmatprep.subr.msk.bf16.mxu0 %vm1900_vm1, %v1516_v52  ;;  %2512 = vst [vmem:[#allocation13_spill] sm:$0xff] %v2183_v42  ;;  %v2186_v43 = vld [vmem:[%s1896_s5 + $0x1f8] sm:$0xff]  ;;  %v1519_v52 = vpack.c.bf16 %v2166_v55, %v2163_v54 }
  0x4d   : > { %1566 = vmatprep.subr.msk.bf16.mxu1 %vm1900_vm1, %v1564_v53  ;;  %2513 = vst [vmem:[#allocation14_spill] sm:$0xff] %v2186_v43  ;;  %v1522_v53 = vpack.c.bf16 %v2180_v14, %v2177_v10  ;;  %v1570_v40 = vpack.c.bf16 %v2186_v43, %v2183_v42  ;;  %v2210_v14 = vld [vmem:[%s1896_s5 + $0x78] sm:$0xff]  ;;  %v644_v43 = vmul.f32 %v1911_v4, %v1911_v4 }
  0x4e   : > { %2514 = vst [vmem:[#allocation15_spill] sm:$0xff] %v2210_v14  ;;  %v1573_v42 = vpack.c.bf16 %v2222_v3, %v2219_v2  ;;  %v596_v4 = vmul.f32 %v1919_v7, %v1919_v7  ;;  %v614_v7 = vmul.f32 %v1935_v13, %v1935_v13  ;;  %v598_v13 = vmul.f32 %v1961_v20, %v1961_v20 }
  0x4f   : > { %v617_v20 = vmul.f32 %v1978_v25, %v1978_v25 }
  0x53   : > { %1521 = vmatpush3.bf16.xpose.msk.msra.mxu0 %vm1900_vm1, %v1519_v52  ;;  %v645_v52 = vmul.f32 %v1916_v6, %v1916_v6  ;;  %v597_v6 = vmul.f32 %v1922_v8, %v1922_v8  ;;  %v615_v8 = vmul.f32 %v1942_v15, %v1942_v15  ;;  %v599_v15 = vmul.f32 %v1964_v21, %v1964_v21 }
  0x54   : > { %1569 = vmatpush3.bf16.xpose.msk.msra.mxu1 %vm1900_vm1, %v1567_v41  ;;  %1524 = vmatprep.subr.msk.bf16.mxu0 %vm1900_vm1, %v1522_v53  ;;  %v1525_v41 = vpack.c.bf16 %v2210_v14, %v2207_v9  ;;  %v1576_v53 = vpack.c.bf16 %v613_v30, %v612_v31  ;;  %v629_v14 = vmul.f32 %v1932_v12, %v1932_v12 }
  0x55   : > { %1572 = vmatprep.subr.msk.bf16.mxu1 %vm1900_vm1, %v1570_v40  ;;  %v1624_v10 = vpack.c.bf16 %v645_v52, %v644_v43  ;;  %v628_v40 = vmul.f32 %v1929_v11, %v1929_v11  ;;  %v646_v11 = vmul.f32 %v1945_v16, %v1945_v16  ;;  %v647_v12 = vmul.f32 %v1948_v17, %v1948_v17 }
  0x56   : > { %v1579_v30 = vpack.c.bf16 %v597_v6, %v596_v4  ;;  %v631_v16 = vmul.f32 %v1972_v23, %v1972_v23  ;;  %v616_v17 = vmul.f32 %v1975_v24, %v1975_v24  ;;  %v649_v21 = vmul.f32 %v1986_v27, %v1986_v27 }
  0x57   : > { %v1627_v31 = vpack.c.bf16 %v629_v14, %v628_v40  ;;  %v1630_v43 = vpack.c.bf16 %v647_v12, %v646_v11  ;;  %v1585_v23 = vpack.c.bf16 %v599_v15, %v598_v13  ;;  %v600_v52 = vmul.f32 %v2003_v32, %v2003_v32  ;;  %v2516_v15 = vld [vmem:[#allocation7_spill] sm:$0xff] }
  0x58   : > { %v1588_v14 = vpack.c.bf16 %v617_v20, %v616_v17  ;;  %v632_v27 = vmul.f32 %v2009_v34, %v2009_v34  ;;  %v618_v32 = vmul.f32 %v2017_v36, %v2017_v36  ;;  %v650_v34 = vmul.f32 %v2023_v38, %v2023_v38 }
  0x59   : > { %v603_v36 = vmul.f32 %v2046_v45, %v2046_v45  ;;  %v635_v38 = vmul.f32 %v2054_v47, %v2054_v47  ;;  %v652_v45 = vmul.f32 %v2063_v50, %v2063_v50  ;;  %v637_v50 = vmul.f32 %v2094_v59, %v2094_v59 }
  0x5a   : > { %v606_v13 = vmul.f32 %v2123_v18, %v2123_v18 }
  0x5b   : > { %1527 = vmatpush3.bf16.xpose.msk.msra.mxu0 %vm1900_vm1, %v1525_v41  ;;  %v633_v41 = vmul.f32 %v2014_v35, %v2014_v35  ;;  %v651_v35 = vmul.f32 %v2026_v39, %v2026_v39  ;;  %v620_v39 = vmul.f32 %v2057_v48, %v2057_v48  ;;  %v605_v48 = vmul.f32 %v2086_v57, %v2086_v57 }
  0x5c   : > { %1575 = vmatpush3.bf16.xpose.msk.msra.mxu1 %vm1900_vm1, %v1573_v42  ;;  %1578 = vmatprep.subr.msk.bf16.mxu0 %vm1900_vm1, %v1576_v53  ;;  %v1582_v42 = vpack.c.bf16 %v615_v8, %v614_v7  ;;  %v602_v7 = vmul.f32 %v2043_v44, %v2043_v44  ;;  %v621_v44 = vmul.f32 %v2060_v49, %v2060_v49 }
  0x5d   : > { %1626 = vmatprep.subr.msk.bf16.mxu1 %vm1900_vm1, %v1624_v10  ;;  %v630_v10 = vmul.f32 %v1967_v22, %v1967_v22  ;;  %v1809_v22 = vmov 1.0   ;;  %v1639_v4 = vpack.c.bf16 %v633_v41, %v632_v27  ;;  %v1642_v40 = vpack.c.bf16 %v651_v35, %v650_v34  ;;  %v2521_v27 = vld [vmem:[#allocation12_spill] sm:$0xff] }
  0x5e   : > { %v1597_v47 = vpack.c.bf16 %v603_v36, %v602_v7  ;;  %v1600_v11 = vpack.c.bf16 %v621_v44, %v620_v39  ;;  %v636_v49 = vmul.f32 %v2089_v58, %v2089_v58  ;;  %v654_v57 = vmul.f32 %v2103_v62, %v2103_v62 }
  0x5f   : > { %v1633_v24 = vpack.c.bf16 %v631_v16, %v630_v10  ;;  %v655_v58 = vmul.f32 %v2106_v63, %v2106_v63  ;;  %v639_v62 = vmul.f32 %v2134_v29, %v2134_v29  ;;  %v2515_v63 = vld [vmem:[#allocation6_spill] sm:$0xff]  ;;  %v2518_v16 = vld [vmem:[#allocation9_spill] sm:$0xff]  ;;  %v642_v36 = vmul.f32 %v2219_v2, %v2219_v2 }
  0x60   : > { %v624_v18 = vmul.f32 %v2515_v63, %v2515_v63  ;;  %v657_v29 = vmul.f32 %v2518_v16, %v2518_v16 }
  0x62   : > { %1377 = vmatmul.mubr.msk.f32.vlgmr.msra.gmra.mrb[0].mxu0 %vm258_vm0, %v1885_v0 }
  0x63   : > { %1411 = vmatmul.mubr.msk.f32.vlgmr.msra.gmra.mrb[0].mxu1 %vm258_vm0, %v1885_v0  ;;  %1581 = vmatpush3.bf16.xpose.msk.msra.mxu0 %vm1900_vm1, %v1579_v30  ;;  %v648_v0 = vmul.f32 %v1983_v26, %v1983_v26  ;;  %v601_v26 = vmul.f32 %v2006_v33, %v2006_v33  ;;  %v619_v33 = vmul.f32 %v2020_v37, %v2020_v37 }
  0x64   : > { %1629 = vmatpush3.bf16.xpose.msk.msra.mxu1 %vm1900_vm1, %v1627_v31  ;;  %1584 = vmatprep.subr.msk.bf16.mxu0 %vm1900_vm1, %v1582_v42  ;;  %v634_v37 = vmul.f32 %v2049_v46, %v2049_v46  ;;  %v653_v46 = vmul.f32 %v2066_v51, %v2066_v51  ;;  %v604_v30 = vmul.f32 %v2083_v56, %v2083_v56 }
  0x65   : > { %1632 = vmatprep.subr.msk.bf16.mxu1 %vm1900_vm1, %v1630_v43  ;;  %1444 = vmatprep.mubr.msk.f32.mxu0 %vm258_vm0, %v1809_v22  ;;  %v1636_v25 = vpack.c.bf16 %v649_v21, %v648_v0  ;;  %v1591_v53 = vpack.c.bf16 %v601_v26, %v600_v52  ;;  %v1594_v6 = vpack.c.bf16 %v619_v33, %v618_v32  ;;  %v2520_v26 = vld [vmem:[#allocation11_spill] sm:$0xff]  ;;  %v2523_v32 = vld [vmem:[#allocation14_spill] sm:$0xff] }
  0x66   : > { %1478 = vmatprep.mubr.msk.f32.mxu1 %vm258_vm0, %v1809_v22  ;;  %v1645_v8 = vpack.c.bf16 %v635_v38, %v634_v37  ;;  %v1648_v12 = vpack.c.bf16 %v653_v46, %v652_v45  ;;  %v622_v51 = vmul.f32 %v2097_v60, %v2097_v60  ;;  %v623_v56 = vmul.f32 %v2100_v61, %v2100_v61 }
  0x67   : > { %v1603_v59 = vpack.c.bf16 %v605_v48, %v604_v30  ;;  %v1651_v31 = vpack.c.bf16 %v637_v50, %v636_v49  ;;  %v1654_v43 = vpack.c.bf16 %v655_v58, %v654_v57  ;;  %v607_v60 = vmul.f32 %v2126_v19, %v2126_v19 }
  0x68   : > { %v1606_v42 = vpack.c.bf16 %v623_v56, %v622_v51  ;;  %v638_v61 = vmul.f32 %v2129_v28, %v2129_v28  ;;  %v625_v19 = vmul.f32 %v2516_v15, %v2516_v15  ;;  %v2517_v28 = vld [vmem:[#allocation8_spill] sm:$0xff]  ;;  %v659_v33 = vmul.f32 %v2523_v32, %v2523_v32 }
  0x69   : > { %v656_v10 = vmul.f32 %v2517_v28, %v2517_v28  ;;  %v1609_v17 = vpack.c.bf16 %v607_v60, %v606_v13  ;;  %v643_v37 = vmul.f32 %v2222_v3, %v2222_v3 }
  0x6a   : > { %v1657_v20 = vpack.c.bf16 %v639_v62, %v638_v61  ;;  %v1612_v0 = vpack.c.bf16 %v625_v19, %v624_v18 }
  0x6b   : > { %1587 = vmatpush3.bf16.xpose.msk.msra.mxu0 %vm1900_vm1, %v1585_v23  ;;  %v1660_v21 = vpack.c.bf16 %v657_v29, %v656_v10  ;;  %v608_v23 = vmul.f32 %v2163_v54, %v2163_v54  ;;  %v626_v54 = vmul.f32 %v2520_v26, %v2520_v26  ;;  %v1669_v38 = vpack.c.bf16 %v643_v37, %v642_v36 }
  0x6c   : > { %1635 = vmatpush3.bf16.xpose.msk.msra.mxu1 %vm1900_vm1, %v1633_v24  ;;  %1590 = vmatprep.subr.msk.bf16.mxu0 %vm1900_vm1, %v1588_v14  ;;  %v609_v24 = vmul.f32 %v2166_v55, %v2166_v55  ;;  %v640_v14 = vmul.f32 %v2169_v5, %v2169_v5  ;;  %v627_v55 = vmul.f32 %v2521_v27, %v2521_v27  ;;  %v2522_v5 = vld [vmem:[#allocation13_spill] sm:$0xff] }
  0x6d   : > { %1638 = vmatprep.subr.msk.bf16.mxu1 %vm1900_vm1, %v1636_v25  ;;  %v2519_v25 = vld [vmem:[#allocation10_spill] sm:$0xff]  ;;  %v658_v41 = vmul.f32 %v2522_v5, %v2522_v5 }
  0x6e   : > { %v641_v52 = vmul.f32 %v2519_v25, %v2519_v25  ;;  %v1615_v34 = vpack.c.bf16 %v609_v24, %v608_v23 }
  0x70   : > { %v1663_v35 = vpack.c.bf16 %v641_v52, %v640_v14 }
  0x73   : > { %1593 = vmatpush3.bf16.xpose.msk.msra.mxu0 %vm1900_vm1, %v1591_v53  ;;  %v1618_v53 = vpack.c.bf16 %v627_v55, %v626_v54 }
  0x74   : > { %1641 = vmatpush3.bf16.xpose.msk.msra.mxu1 %vm1900_vm1, %v1639_v4  ;;  %1596 = vmatprep.subr.msk.bf16.mxu0 %vm1900_vm1, %v1594_v6  ;;  %v1666_v4 = vpack.c.bf16 %v659_v33, %v658_v41  ;;  %v610_v6 = vmul.f32 %v2207_v9, %v2207_v9 }
  0x75   : > { %1644 = vmatprep.subr.msk.bf16.mxu1 %vm1900_vm1, %v1642_v40  ;;  %v2524_v40 = vld [vmem:[#allocation15_spill] sm:$0xff] }
  0x76   : > { %v611_v7 = vmul.f32 %v2524_v40, %v2524_v40 }
  0x78   : > { %v1621_v9 = vpack.c.bf16 %v611_v7, %v610_v6 }
  0x7b   : > { %1599 = vmatpush3.bf16.xpose.msk.msra.mxu0 %vm1900_vm1, %v1597_v47 }
  0x7c   : > { %1647 = vmatpush3.bf16.xpose.msk.msra.mxu1 %vm1900_vm1, %v1645_v8  ;;  %1602 = vmatprep.subr.msk.bf16.mxu0 %vm1900_vm1, %v1600_v11 }
  0x7d   : > { %1650 = vmatprep.subr.msk.bf16.mxu1 %vm1900_vm1, %v1648_v12 }
  0x83   : > { %1605 = vmatpush3.bf16.xpose.msk.msra.mxu0 %vm1900_vm1, %v1603_v59 }
  0x84   : > { %1653 = vmatpush3.bf16.xpose.msk.msra.mxu1 %vm1900_vm1, %v1651_v31  ;;  %1608 = vmatprep.subr.msk.bf16.mxu0 %vm1900_vm1, %v1606_v42 }
  0x85   : > { %1656 = vmatprep.subr.msk.bf16.mxu1 %vm1900_vm1, %v1654_v43 }
  0x8b   : > { %1611 = vmatpush3.bf16.xpose.msk.msra.mxu0 %vm1900_vm1, %v1609_v17 }
  0x8c   : > { %1659 = vmatpush3.bf16.xpose.msk.msra.mxu1 %vm1900_vm1, %v1657_v20  ;;  %1614 = vmatprep.subr.msk.bf16.mxu0 %vm1900_vm1, %v1612_v0 }
  0x8d   : > { %1662 = vmatprep.subr.msk.bf16.mxu1 %vm1900_vm1, %v1660_v21 }
  0x93   : > { %1617 = vmatpush3.bf16.xpose.msk.msra.mxu0 %vm1900_vm1, %v1615_v34 }
  0x94   : > { %1665 = vmatpush3.bf16.xpose.msk.msra.mxu1 %vm1900_vm1, %v1663_v35  ;;  %1620 = vmatprep.subr.msk.bf16.mxu0 %vm1900_vm1, %v1618_v53 }
  0x95   : > { %1668 = vmatprep.subr.msk.bf16.mxu1 %vm1900_vm1, %v1666_v4 }
  0x9b   : > { %1623 = vmatpush3.bf16.xpose.msk.msra.mxu0 %vm1900_vm1, %v1621_v9 }
  0x9c   : > { %1671 = vmatpush3.bf16.xpose.msk.msra.mxu1 %vm1900_vm1, %v1669_v38 }
  0xa2   : > { %1445 = vmatmul.mubr.msk.f32.vlgmr.msra.gmra.mrb[2].mxu0 %vm258_vm0, %v1809_v22 }
  0xa3   : > { %1479 = vmatmul.mubr.msk.f32.vlgmr.msra.gmra.mrb[2].mxu1 %vm258_vm0, %v1809_v22 }
 0x135   : > { %v2428_v2 = vpop.f32.mrb[0].mxu0 }
 0x136   : > { %v2430_v3 = vpop.f32.mrb[0].mxu1  ;;  %v2432_v39 = vpop.f32.mrb[1].mxu0 }
 0x137   : > { %v2434_v44 = vpop.f32.mrb[1].mxu1 }
 0x175   : > { %v921_v45 = vpop.f32.mrb[2].mxu0 }
 0x176   : > { %1713 = vrsqrt.f32 %v921_v45  ;;  %v992_v46 = vpop.f32.mrb[2].mxu1  ;;  %v923_v47 = vpop.f32.mrb[3].mxu0  ;;  %vm999_vm2 = vcmp.eq.f32.partialorder %v921_v45, inf  ;;  %vm1001_vm3 = vcmp.eq.f32.partialorder %v921_v45, 0.0  ;;  %v1002_v12 = vand.u32 2147483648, %v921_v45 }
 0x177   : > { %1715 = vrsqrt.f32 %v992_v46  ;;  %v994_v1 = vpop.f32.mrb[3].mxu1  ;;  %vm1013_vm4 = vcmp.eq.f32.partialorder %v992_v46, inf  ;;  %vm1015_vm5 = vcmp.eq.f32.partialorder %v992_v46, 0.0  ;;  %v1016_v49 = vand.u32 2147483648, %v992_v46 }
 0x178   : > { %1717 = vrsqrt.f32 %v923_v47  ;;  %vm1006_vm6 = vcmp.eq.f32.partialorder %v923_v47, inf  ;;  %vm1008_vm7 = vcmp.eq.f32.partialorder %v923_v47, 0.0  ;;  %v1009_v57 = vand.u32 2147483648, %v923_v47 }
 0x179   : > { %1719 = vrsqrt.f32 %v994_v1  ;;  %vm1020_vm8 = vcmp.eq.f32.partialorder %v994_v1, inf  ;;  %v1023_v60 = vand.u32 2147483648, %v994_v1  ;;  %vm1022_vm9 = vcmp.eq.f32.partialorder %v994_v1, 0.0 }
 0x180   : > { %v1714_v8 = vpop.eup %1713 }
 0x181   : > { %v1716_v11 = vpop.eup %1715  ;;  %v998_v22 = vmul.f32 %v1714_v8, %v921_v45  ;;  %v1096_v8 = vlaneseq }
 0x182   : > { %v1718_v30 = vpop.eup %1717  ;;  %v1012_v48 = vmul.f32 %v1716_v11, %v992_v46 }
 0x183   : > { %v1720_v50 = vpop.eup %1719  ;;  %v1000_v51 = vsel %vm999_vm2, %v921_v45, %v998_v22  ;;  %v1005_v56 = vmul.f32 %v1718_v30, %v923_v47  ;;  %v1078_v30 = vstv %s1077_s6  ;;  %vm1118_vm10 = vcmp.lt.s32.totalorder %v1096_v8, 512 }
 0x184   : > { %v1003_v58 = vsel %vm1001_vm3, %v1002_v12, %v1000_v51  ;;  %v1014_v59 = vsel %vm1013_vm4, %v992_v46, %v1012_v48  ;;  %v1019_v31 = vmul.f32 %v1720_v50, %v994_v1 }
 0x185   : > { %v1025_v42 = vmax.f32 %v1003_v58, 1e-15  ;;  %v1017_v43 = vsel %vm1015_vm5, %v1016_v49, %v1014_v59  ;;  %v1007_v13 = vsel %vm1006_vm6, %v923_v47, %v1005_v56  ;;  %v1810_v47 = vmov 1966171168  }
 0x186   : > { %v1027_v61 = vmax.f32 %v1017_v43, 1e-15  ;;  %v1010_v62 = vsel %vm1008_vm7, %v1009_v57, %v1007_v13  ;;  %v1021_v63 = vsel %vm1020_vm8, %v994_v1, %v1019_v31  ;;  %v1094_v1 = vunpack.c.l.s4 %v1810_v47 }
 0x187   : > { %v1334_v18 = vclamps-f32 %v1025_v42, 0.9999999  ;;  %v1026_v15 = vmax.f32 %v1010_v62, 1e-15  ;;  %v1024_v19 = vsel %vm1022_vm9, %v1023_v60, %v1021_v63  ;;  %v1097_v31 = vshrl.u32 %v1096_v8, 7 }
 0x188   : > { %v1336_v28 = vclamps-f32 %v1027_v61, 0.9999999  ;;  %v1028_v10 = vmax.f32 %v1024_v19, 1e-15  ;;  %v1095_v59 = vunpack.c.0.s8 %v1094_v1 }
 0x189   : > { %v1041_v16 = vsub.f32 1.0, %v1334_v18  ;;  %v1335_v29 = vclamps-f32 %v1026_v15, 0.9999999  ;;  %v1037_v23 = vadd.f32 1.0, %v1334_v18 }
 0x18a   : > { %v1043_v17 = vsub.f32 1.0, %v1336_v28  ;;  %v1337_v20 = vclamps-f32 %v1028_v10, 0.9999999  ;;  %v1039_v14 = vadd.f32 1.0, %v1336_v28 }
 0x18b   : > { %1721 = vrcp.f32 %v1041_v16  ;;  %v1042_v0 = vsub.f32 1.0, %v1335_v29  ;;  %v1038_v26 = vadd.f32 1.0, %v1335_v29 }
 0x18c   : > { %1723 = vrcp.f32 %v1043_v17  ;;  %v1044_v21 = vsub.f32 1.0, %v1337_v20  ;;  %v1040_v55 = vadd.f32 1.0, %v1337_v20 }
 0x18d   : > { %1725 = vrcp.f32 %v1042_v0 }
 0x18e   : > { %1727 = vrcp.f32 %v1044_v21 }
 0x195   : > { %v1722_v24 = vpop.eup %1721 }
 0x196   : > { %v1724_v25 = vpop.eup %1723  ;;  %v1046_v52 = vmul.f32 %v1722_v24, %v1037_v23 }
 0x197   : > { %v1726_v54 = vpop.eup %1725  ;;  %v1050_v27 = vmul.f32 %v1724_v25, %v1039_v14 }
 0x198   : > { %v1728_v5 = vpop.eup %1727  ;;  %1729 = vlog2.f32 %v1046_v52  ;;  %v1048_v41 = vmul.f32 %v1726_v54, %v1038_v26 }
 0x199   : > { %1731 = vlog2.f32 %v1050_v27  ;;  %v1052_v32 = vmul.f32 %v1728_v5, %v1040_v55 }
 0x19a   : > { %1733 = vlog2.f32 %v1048_v41 }
 0x19b   : > { %1735 = vlog2.f32 %v1052_v32 }
 0x19c   : > { %1737 = vrcp.f32 %v1025_v42 }
 0x19d   : > { %1739 = vrcp.f32 %v1027_v61 }
 0x19e   : > { %1741 = vrcp.f32 %v1026_v15 }
 0x19f   : > { %1743 = vrcp.f32 %v1028_v10 }
 0x1a2   : > { %v1730_v33 = vpop.eup %1729 }
 0x1a3   : > { %v1732_v34 = vpop.eup %1731  ;;  %v1054_v35 = vmul.f32 0.6931472, %v1730_v33 }
 0x1a4   : > { %v1734_v53 = vpop.eup %1733  ;;  %v1058_v4 = vmul.f32 0.6931472, %v1732_v34 }
 0x1a5   : > { %v1736_v6 = vpop.eup %1735  ;;  %v1056_v40 = vmul.f32 0.6931472, %v1734_v53  ;;  %v1061_v7 = vmul.f32 0.5, %v1054_v35 }
 0x1a6   : > { %v1738_v36 = vpop.eup %1737  ;;  %v1060_v37 = vmul.f32 0.6931472, %v1736_v6  ;;  %v1063_v9 = vmul.f32 0.5, %v1058_v4 }
 0x1a7   : > { %v1740_v38 = vpop.eup %1739  ;;  %v1062_v45 = vmul.f32 0.5, %v1056_v40  ;;  %v1066_v46 = vmul.f32 %v1738_v36, %v1061_v7 }
 0x1a8   : > { %v1742_v11 = vpop.eup %1741  ;;  %v1064_v22 = vmul.f32 0.5, %v1060_v37  ;;  %v1070_v12 = vmul.f32 %v1740_v38, %v1063_v9 }
 0x1a9   : > { %v1744_v48 = vpop.eup %1743  ;;  %v1068_v49 = vmul.f32 %v1742_v11, %v1062_v45  ;;  %v1073_v50 = vmul.f32 %v1066_v46, %v2428_v2  ;;  %v1098_v2 = vsub.s32 %v1095_v59, %v1097_v31 }
 0x1aa   : > { %v1072_v51 = vmul.f32 %v1744_v48, %v1064_v22  ;;  %v1075_v56 = vmul.f32 %v1070_v12, %v2430_v3 }
 0x1ab   : > { %v1074_v57 = vmul.f32 %v1068_v49, %v2432_v39  ;;  %v1079_v58 = vadd.f32 %v1078_v30, %v1073_v50 }
 0x1ac   : > { %v1076_v42 = vmul.f32 %v1072_v51, %v2434_v44  ;;  %v1081_v43 = vadd.f32 %v1078_v30, %v1075_v56 }
 0x1ad   : > { %v1080_v13 = vadd.f32 %v1078_v30, %v1074_v57  ;;  %v1083_v60 = vmax.f32 %v1079_v58, 0.0 }
 0x1ae   : > { %v1082_v61 = vadd.f32 %v1078_v30, %v1076_v42  ;;  %v1085_v62 = vmax.f32 %v1081_v43, 0.0 }
 0x1af   : > { %v1084_v63 = vmax.f32 %v1080_v13, 0.0 }
 0x1b0   : > { %v1086_v18 = vmax.f32 %v1082_v61, 0.0 }
 0x1b1   : > { %v1091_v3 = vcombine.low %v1083_v60, %v1084_v63 }
 0x1b2   : > { %v1092_v15 = vcombine.low %v1085_v62, %v1086_v18 }
 0x1b3   : > { %v1099_v39 = vrot.slane %v1091_v3, %v1098_v2 }
 0x1b4   : > { %v1106_v19 = vrot.slane %v1092_v15, %v1098_v2 }
 0x1b6   : > { %v1107_v28 = vcombine.low %v1099_v39, %v1106_v19 }
 0x1b8   : > { %v1114_v44 = vrot.slane %v1107_v28, %v1098_v2 }
 0x1ba   : > { %1120 = vst.msk [vmem:[%s177_s9] sm:$0xf] %vm1118_vm10, %v1114_v44 }
 0x1bb   : > { %1758 = shalt.err (!%p1755_p3)
}
 0x1bc   : > { %s1759_s25 = scalar_lea.hbm %s2445_s13, 64  ;;  %s1763_s29 = scalar_lea.hbm %s2490_s3, 128 }
 0x1bd   : > { %p1760_p4 = scmp.ne.s32.totalorder %s2445_s13, %s1759_s25  ;;  %p1764_p9 = scmp.lt.u32.totalorder %s2445_s13, %s2490_s3 }
 0x1be   : > { %p1765_p10 = scmp.lt.u32.totalorder %s1763_s29, %s1759_s25  ;;  %p1767_p12 = scmp.lt.u32.totalorder %s1759_s25, %s2445_s13 }
 0x1bf   : > { %p1761_p7 = pnand %p1760_p4, %p1870_p5 }
 0x1c0   : > { %p1766_p11 = por %p1765_p10, %p1764_p9 }
 0x1c1   : > { %p1762_p8 = pneg %p1761_p7 }
 0x1c2   : > { %p1768_p13 = por %p1767_p12, %p1766_p11 }
 0x1c4   : > { %p1769_p0 = pnand %p1768_p13, %p1762_p8 }
 0x1c6   : > { %1772 = shalt.err (!%p1769_p0)
}
 0x1c7   : > { %1672 = dma.vmem_to_hbm [thread:$0]  (%p1870_p5), %s2447_s10, 64, %s2445_s13, %s1122_s2  }
 0x1c8 PF: > { %p1678_p1 = scmp.ge.s32.totalorder %s1807_s17, 2  ;;  %s1148_s5 = sand.u32 1, %s1795_s14  }
 0x1c9   : > { %s1149_s6 = scalar_lea.sflag [#allocation4], %s1148_s5 }
 0x1ca   : > { %p1675_p2 = pnand %p1678_p1, %p1874_p6 }
 0x1cc   : > { %1790 = dma.done.wait (!%p1675_p2), %s1149_s6, 64  }
 0x1cd   : > { %1792 = vsyncadd (!%p1675_p2), %s1149_s6, 4294967232  ;;  %p14_p3 = scmp.ge.s32.totalorder %s1858_s19, 4   ;;  %s2525_s14 = smov %s1799_s15 }
 0x1ce   : > { %s2526_s15 = smov %s1803_s16  ;;  %s2527_s16 = smov %s1868_s22 }
 0x1cf   : > { %s2528_s17 = smov %s1858_s19  ;;  %16 = sbr.rel (!%p14_p3) target bundleno = 5 (0x5), region = 67 }
 0x1d6   :  { %1154 = vsyncpa [#allocation4], 1 }
 0x1d7   :  { %1156 = vsyncpa [#allocation4 + $0x1], 1 }

</bundles_post_ra>
